<compile_context>
chip_gen: v7x
topology: tpu7x:2x2x1
jax: 0.10.0
libtpu: 0.0.40
codegen_flags: <defaults>
</compile_context>

<pallas_src>
import jax
import jax.numpy as jnp
from jax.experimental import pallas as pl
from jax.experimental.pallas import tpu as pltpu


def _round_up(x: int, m: int) -> int:
    return (x + m - 1) // m * m


def _wce_dice_kernel(logits_ref, target_ref, weights_ref, out_ref):
    """Accumulates per-lane partial sums for CE and Dice into out_ref.

    logits_ref : (1, C, TP)   model logits (any float dtype), pixels on lanes
    target_ref : (1, 1, TP)   int32 labels, -1 = ignore
    weights_ref: (C, 1)       per-class CE weights
    out_ref    : (R_pad, TP)  f32 per-core accumulator block, rows:
                 [0] ce_num  [1] ce_den  [2:2+C] inter  [2+C:2+2C] card
                 [2+2C:2+3C] per-class target counts (presence)
    """
    n_id = pl.program_id(1)   # image axis
    t_id = pl.program_id(2)   # pixel-tile axis

    # Zero this core's accumulator block on its first grid step.
    @pl.when(jnp.logical_and(n_id == 0, t_id == 0))
    def _init():
        out_ref[...] = jnp.zeros_like(out_ref)

    logits = logits_ref[0].astype(jnp.float32)      # (C, TP)
    target = target_ref[0]                          # (1, TP) int32
    w = weights_ref[...].astype(jnp.float32)        # (C, 1)

    C, TP = logits.shape

    # --- softmax statistics: single exp pass, unrolled over C rows (pure VPU) ---
    m = logits[0:1, :]
    for c in range(1, C):
        m = jnp.maximum(m, logits[c:c + 1, :])
    e = jnp.exp(logits - m)                         # (C, TP) one EUP pass
    s = e[0:1, :]
    for c in range(1, C):
        s = s + e[c:c + 1, :]
    probs = e / s                                   # softmax over classes

    # --- ignore_index = -1 handling ---
    valid = target != -1
    validf = valid.astype(jnp.float32)              # (1, TP)
    t_safe = jnp.where(valid, target, 0)

    class_ids = jax.lax.broadcasted_iota(jnp.int32, (C, TP), 0)
    onehot = (class_ids == t_safe).astype(jnp.float32)   # (C, TP)

    # logit[target] and weight[target] via one-hot, unrolled row adds
    oh_logit = onehot * logits
    oh_w = onehot * w
    logit_t = oh_logit[0:1, :]
    wt = oh_w[0:1, :]
    for c in range(1, C):
        logit_t = logit_t + oh_logit[c:c + 1, :]
        wt = wt + oh_w[c:c + 1, :]

    # nll = -log_softmax(logits)[target], analytic (no second exp / logp tile)
    nll = (m - logit_t) + jnp.log(s)                # (1, TP)

    onehot_m = onehot * validf                      # masked one-hot targets
    probs_m = probs * validf                        # masked predictions

    # --- accumulate per-lane partial sums; cross-lane collapse deferred to wrapper ---
    out_ref[0:1, :] += nll * wt * validf            # CE numerator
    out_ref[1:2, :] += wt * validf                  # CE denominator
    out_ref[2:2 + C, :] += probs_m * onehot_m       # Dice intersection / class
    out_ref[2 + C:2 + 2 * C, :] += probs_m + onehot_m   # Dice cardinality / class
    out_ref[2 + 2 * C:2 + 3 * C, :] += onehot_m     # per-class target counts


def wce_dice_loss(pred_nchw, target_nhw, class_weights,
                  weight_ce: float = 0.5, weight_dice: float = 0.5,
                  tile_pixels: int = 2048, num_cores: int = 2):
    """Forward pass of WCEDiceLoss.

    pred_nchw : (N, C, H, W) float logits, target_nhw : (N, H, W) int (-1 = ignore).
    """
    N, C, H, W = pred_nchw.shape
    HW = H * W

    # Pixel-tile sizing: split each image's HW pixels across `num_cores`,
    # lane width a multiple of 128, up to `tile_pixels` lanes per step.
    per_core = -(-HW // num_cores)                      # cdiv
    TP = min(tile_pixels, _round_up(per_core, 128))
    T = -(-per_core // TP)                              # tiles per (core, image)
    HW_pad = num_cores * T * TP

    # No transpose: NCHW already has pixels contiguous on the last axis.
    logits = pred_nchw.reshape(N, C, HW)
    target = target_nhw.reshape(N, 1, HW).astype(jnp.int32)
    if HW_pad != HW:
        pad = HW_pad - HW
        logits = jnp.pad(logits, ((0, 0), (0, 0), (0, pad)))
        target = jnp.pad(target, ((0, 0), (0, 0), (0, pad)), constant_values=-1)
    weights = class_weights.reshape(C, 1).astype(jnp.float32)

    R = 2 + 3 * C                # accumulator rows actually used
    R_pad = _round_up(R, 8)      # sublane-aligned accumulator block

    acc = pl.pallas_call(
        _wce_dice_kernel,
        out_shape=jax.ShapeDtypeStruct((num_cores * R_pad, TP), jnp.float32),
        grid=(num_cores, N, T),
        in_specs=[
            pl.BlockSpec((1, C, TP), lambda c, n, t: (n, 0, c * T + t)),
            pl.BlockSpec((1, 1, TP), lambda c, n, t: (n, 0, c * T + t)),
            pl.BlockSpec((C, 1), lambda c, n, t: (0, 0)),
        ],
        out_specs=pl.BlockSpec((R_pad, TP), lambda c, n, t: (c, 0)),
        compiler_params=pltpu.CompilerParams(
            dimension_semantics=("parallel", "arbitrary", "arbitrary"),
            vmem_limit_bytes=32 * 1024 * 1024),
    )(logits, target, weights)

    # Tiny finalize in the wrapper: combine cores + lanes, then divides.
    acc = acc.reshape(num_cores, R_pad, TP).sum(axis=(0, 2))    # (R_pad,)
    ce_num, ce_den = acc[0], acc[1]
    inter = acc[2:2 + C]
    card = acc[2 + C:2 + 2 * C]
    tsum = acc[2 + 2 * C:2 + 3 * C]

    ce = ce_num / ce_den                                         # weighted CE (mean)
    dice_score = 2.0 * inter / jnp.maximum(card, 1e-7)           # smp soft dice
    loss_c = (1.0 - dice_score) * (tsum > 0).astype(jnp.float32)
    dice = jnp.sum(loss_c) / C
    return weight_ce * ce + weight_dice * dice


def _reference_loss(pred_nchw, target_nhw, class_weights,
                    weight_ce=0.5, weight_dice=0.5):
    """Pure-JAX reference reproducing the PyTorch/smp semantics."""
    N, C, H, W = pred_nchw.shape
    logits = jnp.transpose(pred_nchw, (0, 2, 3, 1)).reshape(-1, C)
    t = target_nhw.reshape(-1)
    valid = (t != -1)
    ts = jnp.where(valid, t, 0)
    logp = jax.nn.log_softmax(logits, axis=-1)
    nll = -jnp.take_along_axis(logp, ts[:, None], axis=-1)[:, 0]
    wt = class_weights[ts]
    ce = jnp.sum(nll * wt * valid) / jnp.sum(wt * valid)
    probs = jax.nn.softmax(logits, axis=-1)
    oh = jax.nn.one_hot(ts, C) * valid[:, None]
    pm = probs * valid[:, None]
    inter = jnp.sum(pm * oh, axis=0)
    card = jnp.sum(pm + oh, axis=0)
    dice_score = 2.0 * inter / jnp.maximum(card, 1e-7)
    lc = (1.0 - dice_score) * (jnp.sum(oh, axis=0) > 0)
    dice = jnp.mean(lc)
    return weight_ce * ce + weight_dice * dice


if __name__ == "__main__":
    key = jax.random.PRNGKey(0)
    k_pred, k_tgt = jax.random.split(key)

    N, C, H, W = 2, 4, 16, 16
    pred = jax.random.normal(k_pred, (N, C, H, W), dtype=jnp.float32)
    # targets in [-1, C): -1 is the ignore_index
    target = jax.random.randint(k_tgt, (N, H, W), -1, C, dtype=jnp.int32)

    # deterministic per-class weights (module takes them as ctor arg)
    class_weights = jnp.array([1.0, 2.0, 0.5, 1.5], dtype=jnp.float32)

    loss = wce_dice_loss(pred, target, class_weights, 0.5, 0.5)
    loss = jax.block_until_ready(loss)

    ref = _reference_loss(pred, target, class_weights, 0.5, 0.5)
    assert jnp.allclose(loss, ref, rtol=1e-5, atol=1e-5), (loss, ref)

    print("KERNEL_OK")
</pallas_src>

<mosaic_0001>
module attributes {stable_mosaic.version = 11 : i64} {
  func.func @_wce_dice_kernel(%arg0: i32, %arg1: i32, %arg2: i32, %arg3: memref<1x4x128xf32, #tpu.memory_space<vmem>>, %arg4: memref<1x1x128xi32, #tpu.memory_space<vmem>>, %arg5: memref<4x1xf32, #tpu.memory_space<vmem>>, %arg6: memref<16x128xf32, #tpu.memory_space<vmem>>) attributes {dimension_semantics = [#tpu.dimension_semantics<parallel>, #tpu.dimension_semantics<arbitrary>, #tpu.dimension_semantics<arbitrary>], iteration_bounds = array<i64: 2, 2, 1>, scalar_prefetch = 0 : i64, scratch_operands = 0 : i64, tpu.core_type = #tpu.core_type<tc>, window_params = [{transform_indices = @transform_0, window_bounds = array<i64: 1, 4, 128>}, {transform_indices = @transform_1, window_bounds = array<i64: 1, 1, 128>}, {pipeline_mode = #tpu.pipeline_mode<synchronous>, transform_indices = @transform_2, window_bounds = array<i64: 4, 1>}, {transform_indices = @transform_3, window_bounds = array<i64: 16, 128>}]} {
    %c0_i32 = arith.constant 0 : i32
    %0 = arith.cmpi eq, %arg1, %c0_i32 : i32
    %c0_i32_0 = arith.constant 0 : i32
    %1 = arith.cmpi eq, %arg2, %c0_i32_0 : i32
    %2 = arith.andi %0, %1 : i1
    %3 = arith.extui %2 : i1 to i32
    %c0_i32_1 = arith.constant 0 : i32
    %4 = arith.cmpi ne, %3, %c0_i32_1 : i32
    scf.if %4 {
      %cst = arith.constant 0.000000e+00 : f32
      %84 = vector.broadcast %cst : f32 to vector<16x128xf32>
      %c0_26 = arith.constant 0 : index
      %c0_27 = arith.constant 0 : index
      %85 = vector.load %arg6[%c0_26, %c0_27] : memref<16x128xf32, #tpu.memory_space<vmem>>, vector<16x128xf32>
      tpu.vector_store %arg6[%c0_26, %c0_27], %84 {strides = array<i32>} : memref<16x128xf32, #tpu.memory_space<vmem>>, vector<16x128xf32>,
    } else {
    }
    %c0 = arith.constant 0 : index
    %c0_2 = arith.constant 0 : index
    %c0_3 = arith.constant 0 : index
    %5 = vector.load %arg3[%c0, %c0_2, %c0_3] : memref<1x4x128xf32, #tpu.memory_space<vmem>>, vector<1x4x128xf32>
    %6 = vector.shape_cast %5 : vector<1x4x128xf32> to vector<4x128xf32>
    %c0_4 = arith.constant 0 : index
    %c0_5 = arith.constant 0 : index
    %c0_6 = arith.constant 0 : index
    %7 = vector.load %arg4[%c0_4, %c0_5, %c0_6] : memref<1x1x128xi32, #tpu.memory_space<vmem>>, vector<1x1x128xi32>
    %8 = vector.shape_cast %7 : vector<1x1x128xi32> to vector<1x128xi32>
    %c0_7 = arith.constant 0 : index
    %c0_8 = arith.constant 0 : index
    %9 = vector.load %arg5[%c0_7, %c0_8] : memref<4x1xf32, #tpu.memory_space<vmem>>, vector<4x1xf32>
    %10 = vector.extract_strided_slice %6 {offsets = [0, 0], sizes = [1, 128], strides = [1, 1]} : vector<4x128xf32> to vector<1x128xf32>
    %11 = vector.extract_strided_slice %6 {offsets = [1, 0], sizes = [1, 128], strides = [1, 1]} : vector<4x128xf32> to vector<1x128xf32>
    %12 = arith.maximumf %10, %11 : vector<1x128xf32>
    %13 = vector.extract_strided_slice %6 {offsets = [2, 0], sizes = [1, 128], strides = [1, 1]} : vector<4x128xf32> to vector<1x128xf32>
    %14 = arith.maximumf %12, %13 : vector<1x128xf32>
    %15 = vector.extract_strided_slice %6 {offsets = [3, 0], sizes = [1, 128], strides = [1, 1]} : vector<4x128xf32> to vector<1x128xf32>
    %16 = arith.maximumf %14, %15 : vector<1x128xf32>
    %17 = vector.broadcast %16 : vector<1x128xf32> to vector<4x128xf32>
    %18 = arith.subf %6, %17 : vector<4x128xf32>
    %19 = math.exp %18 : vector<4x128xf32>
    %20 = vector.extract_strided_slice %19 {offsets = [0, 0], sizes = [1, 128], strides = [1, 1]} : vector<4x128xf32> to vector<1x128xf32>
    %21 = vector.extract_strided_slice %19 {offsets = [1, 0], sizes = [1, 128], strides = [1, 1]} : vector<4x128xf32> to vector<1x128xf32>
    %22 = arith.addf %20, %21 : vector<1x128xf32>
    %23 = vector.extract_strided_slice %19 {offsets = [2, 0], sizes = [1, 128], strides = [1, 1]} : vector<4x128xf32> to vector<1x128xf32>
    %24 = arith.addf %22, %23 : vector<1x128xf32>
    %25 = vector.extract_strided_slice %19 {offsets = [3, 0], sizes = [1, 128], strides = [1, 1]} : vector<4x128xf32> to vector<1x128xf32>
    %26 = arith.addf %24, %25 : vector<1x128xf32>
    %27 = vector.broadcast %26 : vector<1x128xf32> to vector<4x128xf32>
    %28 = arith.divf %19, %27 : vector<4x128xf32>
    %c-1_i32 = arith.constant -1 : i32
    %29 = vector.broadcast %c-1_i32 : i32 to vector<1x128xi32>
    %30 = arith.cmpi ne, %8, %29 : vector<1x128xi32>
    %31 = arith.extui %30 : vector<1x128xi1> to vector<1x128xi32>
    %32 = arith.sitofp %31 : vector<1x128xi32> to vector<1x128xf32>
    %c0_i32_9 = arith.constant 0 : i32
    %33 = vector.broadcast %c0_i32_9 : i32 to vector<1x128xi32>
    %34 = arith.select %30, %8, %33 : vector<1x128xi1>, vector<1x128xi32>
    %35 = tpu.iota {dimensions = array<i32: 0>} : vector<4x128xi32>
    %36 = vector.broadcast %34 : vector<1x128xi32> to vector<4x128xi32>
    %37 = arith.cmpi eq, %35, %36 : vector<4x128xi32>
    %38 = arith.extui %37 : vector<4x128xi1> to vector<4x128xi32>
    %39 = arith.sitofp %38 : vector<4x128xi32> to vector<4x128xf32>
    %40 = arith.mulf %39, %6 : vector<4x128xf32>
    %41 = vector.broadcast %9 : vector<4x1xf32> to vector<4x128xf32>
    %42 = arith.mulf %39, %41 : vector<4x128xf32>
    %43 = vector.extract_strided_slice %40 {offsets = [0, 0], sizes = [1, 128], strides = [1, 1]} : vector<4x128xf32> to vector<1x128xf32>
    %44 = vector.extract_strided_slice %42 {offsets = [0, 0], sizes = [1, 128], strides = [1, 1]} : vector<4x128xf32> to vector<1x128xf32>
    %45 = vector.extract_strided_slice %40 {offsets = [1, 0], sizes = [1, 128], strides = [1, 1]} : vector<4x128xf32> to vector<1x128xf32>
    %46 = arith.addf %43, %45 : vector<1x128xf32>
    %47 = vector.extract_strided_slice %42 {offsets = [1, 0], sizes = [1, 128], strides = [1, 1]} : vector<4x128xf32> to vector<1x128xf32>
    %48 = arith.addf %44, %47 : vector<1x128xf32>
    %49 = vector.extract_strided_slice %40 {offsets = [2, 0], sizes = [1, 128], strides = [1, 1]} : vector<4x128xf32> to vector<1x128xf32>
    %50 = arith.addf %46, %49 : vector<1x128xf32>
    %51 = vector.extract_strided_slice %42 {offsets = [2, 0], sizes = [1, 128], strides = [1, 1]} : vector<4x128xf32> to vector<1x128xf32>
    %52 = arith.addf %48, %51 : vector<1x128xf32>
    %53 = vector.extract_strided_slice %40 {offsets = [3, 0], sizes = [1, 128], strides = [1, 1]} : vector<4x128xf32> to vector<1x128xf32>
    %54 = arith.addf %50, %53 : vector<1x128xf32>
    %55 = vector.extract_strided_slice %42 {offsets = [3, 0], sizes = [1, 128], strides = [1, 1]} : vector<4x128xf32> to vector<1x128xf32>
    %56 = arith.addf %52, %55 : vector<1x128xf32>
    %57 = arith.subf %16, %54 : vector<1x128xf32>
    %58 = math.log %26 : vector<1x128xf32>
    %59 = arith.addf %57, %58 : vector<1x128xf32>
    %60 = vector.broadcast %32 : vector<1x128xf32> to vector<4x128xf32>
    %61 = arith.mulf %39, %60 : vector<4x128xf32>
    %62 = vector.broadcast %32 : vector<1x128xf32> to vector<4x128xf32>
    %63 = arith.mulf %28, %62 : vector<4x128xf32>
    %c0_10 = arith.constant 0 : index
    %c0_11 = arith.constant 0 : index
    %64 = vector.load %arg6[%c0_10, %c0_11] : memref<16x128xf32, #tpu.memory_space<vmem>>, vector<1x128xf32>
    %65 = arith.mulf %59, %56 : vector<1x128xf32>
    %66 = arith.mulf %65, %32 : vector<1x128xf32>
    %67 = arith.addf %64, %66 : vector<1x128xf32>
    %c0_12 = arith.constant 0 : index
    %c0_13 = arith.constant 0 : index
    %68 = vector.load %arg6[%c0_12, %c0_13] : memref<16x128xf32, #tpu.memory_space<vmem>>, vector<1x128xf32>
    tpu.vector_store %arg6[%c0_12, %c0_13], %67 {strides = array<i32>} : memref<16x128xf32, #tpu.memory_space<vmem>>, vector<1x128xf32>,
    %c1 = arith.constant 1 : index
    %c0_14 = arith.constant 0 : index
    %69 = vector.load %arg6[%c1, %c0_14] : memref<16x128xf32, #tpu.memory_space<vmem>>, vector<1x128xf32>
    %70 = arith.mulf %56, %32 : vector<1x128xf32>
    %71 = arith.addf %69, %70 : vector<1x128xf32>
    %c1_15 = arith.constant 1 : index
    %c0_16 = arith.constant 0 : index
    %72 = vector.load %arg6[%c1_15, %c0_16] : memref<16x128xf32, #tpu.memory_space<vmem>>, vector<1x128xf32>
    tpu.vector_store %arg6[%c1_15, %c0_16], %71 {strides = array<i32>} : memref<16x128xf32, #tpu.memory_space<vmem>>, vector<1x128xf32>,
    %c2 = arith.constant 2 : index
    %c0_17 = arith.constant 0 : index
    %73 = vector.load %arg6[%c2, %c0_17] : memref<16x128xf32, #tpu.memory_space<vmem>>, vector<4x128xf32>
    %74 = arith.mulf %63, %61 : vector<4x128xf32>
    %75 = arith.addf %73, %74 : vector<4x128xf32>
    %c2_18 = arith.constant 2 : index
    %c0_19 = arith.constant 0 : index
    %76 = vector.load %arg6[%c2_18, %c0_19] : memref<16x128xf32, #tpu.memory_space<vmem>>, vector<4x128xf32>
    tpu.vector_store %arg6[%c2_18, %c0_19], %75 {strides = array<i32>} : memref<16x128xf32, #tpu.memory_space<vmem>>, vector<4x128xf32>,
    %c6 = arith.constant 6 : index
    %c0_20 = arith.constant 0 : index
    %77 = vector.load %arg6[%c6, %c0_20] : memref<16x128xf32, #tpu.memory_space<vmem>>, vector<4x128xf32>
    %78 = arith.addf %63, %61 : vector<4x128xf32>
    %79 = arith.addf %77, %78 : vector<4x128xf32>
    %c6_21 = arith.constant 6 : index
    %c0_22 = arith.constant 0 : index
    %80 = vector.load %arg6[%c6_21, %c0_22] : memref<16x128xf32, #tpu.memory_space<vmem>>, vector<4x128xf32>
    tpu.vector_store %arg6[%c6_21, %c0_22], %79 {strides = array<i32>} : memref<16x128xf32, #tpu.memory_space<vmem>>, vector<4x128xf32>,
    %c10 = arith.constant 10 : index
    %c0_23 = arith.constant 0 : index
    %81 = vector.load %arg6[%c10, %c0_23] : memref<16x128xf32, #tpu.memory_space<vmem>>, vector<4x128xf32>
    %82 = arith.addf %81, %61 : vector<4x128xf32>
    %c10_24 = arith.constant 10 : index
    %c0_25 = arith.constant 0 : index
    %83 = vector.load %arg6[%c10_24, %c0_25] : memref<16x128xf32, #tpu.memory_space<vmem>>, vector<4x128xf32>
    tpu.vector_store %arg6[%c10_24, %c0_25], %82 {strides = array<i32>} : memref<16x128xf32, #tpu.memory_space<vmem>>, vector<4x128xf32>,
    return
  }
  func.func @transform_0(%arg0: i32, %arg1: i32, %arg2: i32) -> (i32, i32, i32) {
    %c1_i32 = arith.constant 1 : i32
    %0 = arith.muli %arg0, %c1_i32 : i32
    %1 = arith.addi %0, %arg2 : i32
    %c0_i32 = arith.constant 0 : i32
    %c0_i32_0 = arith.constant 0 : i32
    return %arg1, %c0_i32, %1 : i32, i32, i32
  }
  func.func @transform_1(%arg0: i32, %arg1: i32, %arg2: i32) -> (i32, i32, i32) {
    %c1_i32 = arith.constant 1 : i32
    %0 = arith.muli %arg0, %c1_i32 : i32
    %1 = arith.addi %0, %arg2 : i32
    %c0_i32 = arith.constant 0 : i32
    %c0_i32_0 = arith.constant 0 : i32
    return %arg1, %c0_i32, %1 : i32, i32, i32
  }
  func.func @transform_2(%arg0: i32, %arg1: i32, %arg2: i32) -> (i32, i32) {
    %c0_i32 = arith.constant 0 : i32
    %c0_i32_0 = arith.constant 0 : i32
    %c0_i32_1 = arith.constant 0 : i32
    return %c0_i32, %c0_i32_0 : i32, i32
  }
  func.func @transform_3(%arg0: i32, %arg1: i32, %arg2: i32) -> (i32, i32) {
    %c0_i32 = arith.constant 0 : i32
    %c0_i32_0 = arith.constant 0 : i32
    return %arg0, %c0_i32 : i32, i32
  }
}

</mosaic_0001>

<bundles_post_ra>
// kernel: tpu_custom_call.1
= control target key start
LH: loop header
LB: loop body
LE: loop exit
PB: predicated region body
PF: predicated region fallthrough
CT: control target
= control target key end

     0   :  { %8 = vsyncpa [#allocation3], 0  ;;  %s1051_s0 = inlined_call_operand.hbm [shape: f32[2,4,256], index: 0, kind: input, shape index: {}]   ;;  %s1052_s1 = inlined_call_operand.vmem [shape: s32[2,1,256], index: 1, kind: input, shape index: {}]   ;;  %s1053_s2 = inlined_call_operand.vmem [shape: f32[4,1], index: 2, kind: input, shape index: {}]   ;;  %s1054_s3 = inlined_call_operand.hbm [shape: f32[32,128], index: 3, kind: output, shape index: {}]  }
   0x1   :  { %10 = vsyncpa [#allocation3 + $0x1], 0 }
   0x2   :  { %11 = vsyncpa [#allocation4], 0 }
   0x3   :  { %13 = vsyncpa [#allocation4 + $0x1], 0  ;;  %s800_s12 = smov 0   ;;  %s802_s13 = smov 0  }
   0x4   :  { %s804_s14 = smov 0   ;;  %s806_s15 = smov 0  }
   0x5   :  { %s808_s16 = smov 0   ;;  %s810_s17 = smov 0  }
   0x6   :  { %s812_s18 = smov 0   ;;  %s814_s19 = smov 0  }
   0x7   :  { %s816_s20 = smov 0   ;;  %s818_s21 = smov 0  }
   0x8   :  { %s820_s22 = smov 0  }
   0x9 LB: > { %s484_s23 = sadd.s32 4294967295, %s771_s22   ;;  %s485_s24 = sadd.s32 4294967294, %s771_s22   ;;  %s771_s22 = sphi %s820_s22, %s19_s22   ;;  %s767_s21 = sphi %s818_s21, %s1080_s21   ;;  %s763_s20 = sphi %s816_s20, %s1079_s20   ;;  %s759_s19 = sphi %s814_s19, %s1078_s19   ;;  %s755_s18 = sphi %s812_s18, %s1077_s18   ;;  %s751_s17 = sphi %s810_s17, %s1076_s17   ;;  %s747_s16 = sphi %s808_s16, %s1075_s16   ;;  %s743_s15 = sphi %s806_s15, %s1074_s15   ;;  %s739_s14 = sphi %s804_s14, %s1073_s14   ;;  %s735_s13 = sphi %s802_s13, %s1072_s13   ;;  %s731_s12 = sphi %s800_s12, %s1071_s12  }
   0xa   : > { %s34_s25 = sadd.s32 1, %s763_s20  ;;  %s38_s26 = sadd.s32 1, %s767_s21 }
   0xb   : > { %p36_p0 = scmp.ge.s32.totalorder %s34_s25, 2  ;;  %s49_s27 = sadd.s32 1, %s751_s17 }
   0xc   : > { %p56_p1 = scmp.ne.s32.totalorder %s751_s17, %s747_s16  ;;  %p57_p2 = scmp.eq.s32.totalorder %s771_s22, 0 }
   0xd   : > { %s1082_s25 = smov (%p36_p0, %s34_s25), 0  ;;  %s1084_s26 = smov (!%p36_p0, %s38_s26), %s767_s21 }
   0xe   : > { %1058 = sst [smem:[#allocation8_spill]] %s1082_s25  ;;  %s44_s28 = ssub.s32 %s763_s20, %s1082_s25 }
   0xf   : > { %p866_p3 = por %p57_p2, %p56_p1  ;;  %p40_p4 = scmp.ge.s32.totalorder %s1084_s26, 2 }
  0x10   : > { %p62_p5 = scmp.ne.s32.totalorder %s747_s16, %s743_s15  ;;  %p63_p6 = scmp.eq.s32.totalorder %s484_s23, 0 }
  0x11   : > { %s126_s30 = sadd.s32 1, %s739_s14  ;;  %s1086_s26 = smov (%p40_p4, %s1084_s26), 0 }
  0x12   : > { %1060 = sst [smem:[#allocation9_spill]] %s1086_s26  ;;  %p874_p7 = por %p63_p6, %p62_p5 }
  0x13   : > { %p136_p8 = scmp.ne.s32.totalorder %s739_s14, %s735_s13  ;;  %s45_s5 = ssub.s32 %s767_s21, %s1086_s26 }
  0x14   : > { %p137_p9 = scmp.eq.s32.totalorder %s484_s23, 3  ;;  %s46_s6 = sor.u32 %s45_s5, %s44_s28 }
  0x15   : > { %p124_p10 = scmp.eq.s32.totalorder %s45_s5, 0  ;;  %p47_p11 = scmp.eq.s32.totalorder %s46_s6, 0 }
  0x16   : > { %p882_p12 = por %p137_p9, %p136_p8  ;;  %p142_p13 = scmp.ne.s32.totalorder %s735_s13, %s731_s12 }
  0x17   : > { %s887_s8 = scalar_select %p124_p10, %s739_s14, %s126_s30  }
  0x18   : > { %s1062_s7 = scalar_select %p882_p12, 1, 0 }
  0x19   : > { %s890_s9 = scalar_select %p47_p11, %s751_s17, %s49_s27  }
  0x1a   : > { %p143_p0 = scmp.eq.s32.totalorder %s485_s24, 3  ;;  %p517_p1 = scmp.lt.s32.totalorder %s771_s22, 4 }
  0x1b   : > { %s166_s11 = sand.u32 1, %s751_s17   ;;  %s489_s23 = sshll.u32 %s763_s20, 1 }
  0x1c   : > { %p895_p2 = por %p143_p0, %p142_p13  ;;  %s488_s15 = sshll.u32 %s166_s11, 2 }
  0x1d   : > { %s176_s28 = sadd.s32 %s767_s21, %s489_s23  ;;  %s170_s5 = scalar_lea.vmem [#allocation2], %s488_s15 }
  0x1e   : > { %s1063_s10 = scalar_select %p895_p2, 1, 0 }
  0x1f   : > { %s180_s6 = sshll.u32 %s170_s5, 4  ;;  %s490_s26 = sshll.u32 %s176_s28, 6  ;;  %s902_s6 = int_to_ptr.vmem [resolvable:$true] %s180_s6 }
  0x20   : > { %s907_s25 = scalar_lea.hbm %s1051_s0, %s490_s26  ;;  %p911_p4 = pnand %p517_p1, %p866_p3 }
  0x21   : > { %s167_s15 = scalar_lea.sflag [#allocation3], %s166_s11  ;;  %s619_s23 = scalar_lea.hbm %s907_s25, 64 }
  0x22   : > { %p620_p8 = scmp.ne.s32.totalorder %s907_s25, %s619_s23  ;;  %p621_p9 = pneg %p911_p4 }
  0x23   : > { %s624_s28 = scalar_lea.hbm %s1051_s0, 256  ;;  %p625_p3 = scmp.lt.u32.totalorder %s907_s25, %s1051_s0 }
  0x24   : > { %p622_p10 = pnand %p621_p9, %p620_p8  ;;  %p626_p13 = scmp.lt.u32.totalorder %s624_s28, %s619_s23 }
  0x25   : > { %p628_p1 = scmp.lt.u32.totalorder %s619_s23, %s907_s25 }
  0x26   : > { %p623_p11 = pneg %p622_p10  ;;  %p627_p0 = por %p626_p13, %p625_p3 }
  0x28   : > { %p629_p5 = por %p628_p1, %p627_p0 }
  0x2a   : > { %p630_p6 = pnand %p629_p5, %p623_p11 }
  0x2c   : > { %633 = shalt.err (!%p630_p6)
}
  0x2d   : > { %s634_s11 = scalar_lea.vmem %s902_s6, 64  ;;  %s773_s27 = smov [#allocation2]  }
  0x2e   : > { %p635_p8 = scmp.ne.s32.totalorder %s902_s6, %s634_s11  ;;  %s639_s26 = sshll.u32 %s773_s27, 4  ;;  %s640_s26 = int_to_ptr.vmem [resolvable:$false] %s639_s26 }
  0x2f   : > { %s641_s29 = scalar_lea.vmem %s640_s26, 128  ;;  %p642_p12 = scmp.lt.s32.totalorder %s902_s6, %s640_s26 }
  0x30   : > { %p637_p10 = pnand %p635_p8, %p621_p9  ;;  %p643_p3 = scmp.lt.s32.totalorder %s641_s29, %s634_s11 }
  0x32   : > { %p638_p2 = pneg %p637_p10  ;;  %p644_p13 = por %p643_p3, %p642_p12 }
  0x34   : > { %p645_p0 = pnand %p644_p13, %p638_p2 }
  0x36   : > { %648 = shalt.err (!%p645_p0)
}
  0x37   : > { %512 = dma.hbm_to_vmem [thread:$0]  (!%p911_p4), %s907_s25, 64, %s902_s6, %s167_s15  }
  0x38   : > { %p1065_p5 = scmp.lt.s32.totalorder %s771_s22, 5  ;;  %p1066_p6 = scmp.ge.s32.totalorder %s771_s22, 1 }
  0x3a   : > { %p198_p9 = pnand %p1066_p6, %p1065_p5 }
  0x3b   : > { %s203_s23 = sand.u32 (!%p198_p9), 1, %s747_s16  }
  0x3c   : > { %201 = sbr.rel (%p198_p9) target bundleno = 241 (0xf1), region = 32  ;;  %s492_s28 = sshll.u32 (!%p198_p9), %s203_s23, 2 }
  0x3d   : > { %s204_s5 = scalar_lea.sflag (!%p198_p9), [#allocation3], %s203_s23  ;;  %s207_s30 = scalar_lea.vmem (!%p198_p9), [#allocation2], %s492_s28 }
  0x43   : > { %722 = dma.done.wait (%p874_p7), %s204_s5, 64  }
  0x44   : > { %724 = vsyncadd (%p874_p7), %s204_s5, 4294967232  ;;  %s235_s25 = sand.u32 1, %s735_s13   ;;  %p240_p12 = scmp.lt.s32.totalorder %s755_s18, 1 }
  0x45   : > { %s493_s6 = sshll.u32 %s235_s25, 4  ;;  %p242_p2 = scmp.lt.s32.totalorder %s759_s19, 1 }
  0x46   : > { %p249_p4 = scmp.eq.s32.totalorder %s755_s18, 0  ;;  %s1088_s18 = smov (!%p240_p12, %s755_s18), 1 }
  0x47   : > { %s243_s24 = scalar_select %p242_p2, %s759_s19, 1 }
  0x48   : > { %s494_s15 = sshll.u32 %s1088_s18, 1  ;;  %s962_s29 = scalar_lea.vmem [#allocation5], %s493_s6  ;;  %v774_v0 = vmov (%p249_p4), 0.0  }
  0x49   : > { %s245_s11 = sadd.s32 %s494_s15, %s243_s24  ;;  %254 = sbr.rel (!%p249_p4) target bundleno = 80 (0x50), region = 40  ;;  %255 = vst [vmem:[%s962_s29] sm:$0xff] (%p249_p4), %v774_v0  ;;  %256 = vst [vmem:[%s962_s29 + $0x8] sm:$0xff] (%p249_p4), %v774_v0 }
  0x4a   : > { %s246_s26 = scalar_lea.vmem %s1052_s1, %s245_s11 }
  0x50 PF: > { %v259_v1 = vld [vmem:[%s1053_s2] sm:$0xf]  ;;  %v270_v2 = vlaneseq  ;;  %v775_v3 = vmov 0   ;;  %v776_v15 = vmov 0.0   ;;  %v354_v48 = vld [vmem:[%s962_s29 + $0x2] sm:$0xf] }
  0x51   : > { %612 = vset.pattern.permute.xlu0 %v775_v3  ;;  %v257_v5 = vld [vmem:[%s207_s30] sm:$0xf]  ;;  %v358_v49 = vld [vmem:[%s962_s29 + $0x6] sm:$0xf]  ;;  %v350_v62 = vld [vmem:[%s962_s29 + $0x1] sm:$0x1] }
  0x52   : > { %309 = vperm.xlu0 %612, %v259_v1   ;;  %v271_v4 = vshrl.u32 %v270_v2, 7  ;;  %v258_v6 = vld [vmem:[%s246_s26] sm:$0x1]  ;;  %v261_v7 = vrot.slane %v257_v5, 1  ;;  %v264_v8 = vrot.slane %v257_v5, 2  ;;  %v267_v11 = vrot.slane %v257_v5, 3 }
  0x53   : > { %vm293_vm0 = vcmp.ne.s32.totalorder %v258_v6, 4294967295  ;;  %v362_v24 = vld [vmem:[%s962_s29 + $0xa] sm:$0xf]  ;;  %s504_s18 = sshll.u32 %s759_s19, 8  ;;  %s379_s5 = sshll.u32 %s962_s29, 4  ;;  %s984_s5 = int_to_ptr.vmem [resolvable:$true] %s379_s5 }
  0x54   : > { %v272_v9 = vsub.s32 0, %v271_v4  ;;  %v263_v10 = vmax.f32 %v257_v5, %v261_v7  ;;  %v296_v12 = vsel %vm293_vm0, %v258_v6, 0  ;;  %v496_v16 = vsel %vm293_vm0, 1.0, %v776_v15  ;;  %v345_v1 = vld [vmem:[%s962_s29] sm:$0x1]  ;;  %s982_s24 = scalar_lea.hbm %s1054_s3, %s504_s18  ;;  %s990_s15 = scalar_lea.sflag [#allocation4], %s235_s25 }
  0x55   : > { %s649_s19 = scalar_lea.vmem %s984_s5, 256  ;;  %p1067_p11 = scmp.ne.s32.totalorder %s1062_s7, 0 }
  0x56   : > { %v302_v13 = vrot.slane %v296_v12, %v272_v9  ;;  %v266_v14 = vmax.f32 %v263_v10, %v264_v8  ;;  %v341_v20 = vrot.slane %v496_v16, %v272_v9  ;;  %p650_p7 = scmp.ne.s32.totalorder %s984_s5, %s649_s19  ;;  %s777_s11 = smov [#allocation5]  }
  0x57   : > { %s653_s27 = sshll.u32 %s777_s11, 4  ;;  %s654_s27 = int_to_ptr.vmem [resolvable:$false] %s653_s27 }
  0x58   : > { %vm303_vm1 = vcmp.eq.s32.totalorder %v271_v4, %v302_v13  ;;  %v269_v17 = vmax.f32 %v266_v14, %v267_v11  ;;  %p651_p1 = pnand %p650_p7, %p1067_p11  ;;  %s655_s4 = scalar_lea.vmem %s654_s27, 512 }
  0x59   : > { %v497_v18 = vsel %vm303_vm1, 1.0, %v776_v15  ;;  %p656_p10 = scmp.lt.s32.totalorder %s984_s5, %s654_s27  ;;  %p657_p3 = scmp.lt.s32.totalorder %s655_s4, %s649_s19 }
  0x5a   : > { %v306_v19 = vmul.f32 %v497_v18, %v257_v5  ;;  %v273_v21 = vrot.slane %v269_v17, %v272_v9  ;;  %v343_v28 = vmul.f32 %v497_v18, %v341_v20  ;;  %p652_p8 = pneg %p651_p1 }
  0x5b   : > { %p658_p13 = por %p657_p3, %p656_p10 }
  0x5c   : > { %v314_v22 = vrot.slane %v306_v19, 1  ;;  %v321_v23 = vrot.slane %v306_v19, 2  ;;  %v274_v25 = vsub.f32 %v257_v5, %v273_v21  ;;  %v327_v27 = vrot.slane %v306_v19, 3 }
  0x5d   : > { %v363_v31 = vadd.f32 %v362_v24, %v343_v28  ;;  %p659_p0 = pnand %p658_p13, %p652_p8 }
  0x5e   : > { %v316_v26 = vadd.f32 %v314_v22, %v306_v19  ;;  %v275_v29 = vmul.f32 1.442695, %v274_v25 }
  0x5f   : > { %364 = vst [vmem:[%s962_s29 + $0xa] sm:$0xf] %v363_v31 }
  0x60   : > { %v323_v30 = vadd.f32 %v321_v23, %v316_v26  ;;  %613 = vpow2.f32 %v275_v29 }
  0x62   : > { %v329_v32 = vadd.f32 %v327_v27, %v323_v30 }
  0x64   : > { %v333_v33 = vsub.f32 %v269_v17, %v329_v32 }
  0x6a   : > { %v614_v34 = vpop.eup %613 }
  0x6b   : > { %v278_v35 = vrot.slane %v614_v34, 1  ;;  %v281_v36 = vrot.slane %v614_v34, 2  ;;  %v284_v38 = vrot.slane %v614_v34, 3 }
  0x6d   : > { %v280_v37 = vadd.f32 %v614_v34, %v278_v35 }
  0x6f   : > { %v283_v39 = vadd.f32 %v281_v36, %v280_v37 }
  0x71   : > { %v286_v40 = vadd.f32 %v284_v38, %v283_v39 }
  0x73   : > { %v290_v41 = vrot.slane %v286_v40, %v272_v9  ;;  %615 = vlog2.f32 %v286_v40 }
  0x75   : > { %617 = vrcp.f32 %v290_v41 }
  0x7d   : > { %v616_v42 = vpop.eup %615 }
  0x7e   : > { %v335_v43 = vmul.f32 0.6931472, %v616_v42 }
  0x7f   : > { %v618_v44 = vpop.eup %617 }
  0x80   : > { %v292_v45 = vmul.f32 %v618_v44, %v614_v34  ;;  %v336_v46 = vadd.f32 %v335_v43, %v333_v33 }
  0x82   : > { %v344_v47 = vmul.f32 %v341_v20, %v292_v45 }
  0x84   : > { %v355_v50 = vmul.f32 %v344_v47, %v343_v28  ;;  %v359_v51 = vadd.f32 %v344_v47, %v343_v28 }
  0x86   : > { %v356_v52 = vadd.f32 %v355_v50, %v354_v48  ;;  %v360_v53 = vadd.f32 %v359_v51, %v358_v49 }
  0x88   : > { %357 = vst [vmem:[%s962_s29 + $0x2] sm:$0xf] %v356_v52  ;;  %361 = vst [vmem:[%s962_s29 + $0x6] sm:$0xf] %v360_v53 }
  0xd1   : > { %v310_v54 = vpop.permute.xlu0 %309 }
  0xd2   : > { %v312_v55 = vmul.f32 %v497_v18, %v310_v54 }
  0xd4   : > { %v318_v56 = vrot.slane %v312_v55, 1  ;;  %v324_v58 = vrot.slane %v312_v55, 2  ;;  %v330_v60 = vrot.slane %v312_v55, 3 }
  0xd6   : > { %v320_v57 = vadd.f32 %v318_v56, %v312_v55 }
  0xd8   : > { %v326_v59 = vadd.f32 %v324_v58, %v320_v57 }
  0xda   : > { %v332_v61 = vadd.f32 %v330_v60, %v326_v59 }
  0xdc   : > { %v346_v63 = vmul.f32 %v336_v46, %v332_v61  ;;  %v351_v0 = vmul.f32 %v496_v16, %v332_v61 }
  0xde   : > { %v347_v2 = vmul.f32 %v496_v16, %v346_v63  ;;  %v352_v3 = vadd.f32 %v351_v0, %v350_v62 }
  0xe0   : > { %v348_v4 = vadd.f32 %v347_v2, %v345_v1  ;;  %353 = vst [vmem:[%s962_s29 + $0x1] sm:$0x1] %v352_v3 }
  0xe2   : > { %349 = vst [vmem:[%s962_s29] sm:$0x1] %v348_v4 }
  0xe3   : > { %662 = shalt.err (!%p659_p0)
}
  0xe4   : > { %s663_s25 = scalar_lea.hbm %s982_s24, 256  ;;  %s667_s23 = scalar_lea.hbm %s1054_s3, 512 }
  0xe5   : > { %p664_p5 = scmp.ne.s32.totalorder %s982_s24, %s663_s25  ;;  %p668_p12 = scmp.lt.u32.totalorder %s982_s24, %s1054_s3 }
  0xe6   : > { %p669_p2 = scmp.lt.u32.totalorder %s667_s23, %s663_s25  ;;  %p671_p7 = scmp.lt.u32.totalorder %s663_s25, %s982_s24 }
  0xe7   : > { %p665_p6 = pnand %p664_p5, %p1067_p11 }
  0xe8   : > { %p670_p4 = por %p669_p2, %p668_p12 }
  0xe9   : > { %p666_p9 = pneg %p665_p6 }
  0xea   : > { %p672_p1 = por %p671_p7, %p670_p4 }
  0xec   : > { %p673_p8 = pnand %p672_p1, %p666_p9 }
  0xee   : > { %676 = shalt.err (!%p673_p8)
}
  0xef   : > { %s778_s30 = smov 128   ;;  %s779_s6 = smov 8  }
  0xf0   : > { %507 = dma.vmem_to_hbm [thread:$0]  (%p1067_p11), %s984_s5, 256, %s982_s24, %s990_s15, %s778_s30, %s778_s30, %s779_s6  }
  0xf1 PF: > { %p518_p10 = scmp.ge.s32.totalorder %s771_s22, 2  ;;  %s394_s19 = sand.u32 1, %s731_s12  }
  0xf2   : > { %p1068_p3 = scmp.ne.s32.totalorder %s1063_s10, 0  ;;  %s395_s11 = scalar_lea.sflag [#allocation4], %s394_s19 }
  0xf4   : > { %p514_p13 = pnand %p518_p10, %p1068_p3 }
  0xf6   : > { %726 = dma.done.wait (!%p514_p13), %s395_s11, 256  }
  0xf7   : > { %728 = vsyncadd (!%p514_p13), %s395_s11, 4294967040  ;;  %s19_s22 = sadd.s32 1, %s771_s22   ;;  %s1069_s7 = sld [smem:[#allocation8_spill]] }
  0xf8   : > { %p16_p0 = scmp.ge.s32.totalorder %s19_s22, 6   ;;  %s1070_s5 = sld [smem:[#allocation9_spill]] }
  0xf9   : > { %s1071_s12 = smov %s735_s13  ;;  %s1072_s13 = smov %s739_s14 }
  0xfa   : > { %s1073_s14 = smov %s887_s8  ;;  %s1074_s15 = smov %s747_s16 }
  0xfb   : > { %s1075_s16 = smov %s751_s17  ;;  %s1076_s17 = smov %s890_s9 }
  0xfc   : > { %s1077_s18 = smov %s763_s20  ;;  %s1078_s19 = smov %s767_s21 }
  0xfd   : > { %s1079_s20 = smov %s1069_s7  ;;  %18 = sbr.rel (!%p16_p0) target bundleno = 9 (0x9), region = 84 }
  0xfe   : > { %s1080_s21 = smov %s1070_s5 }
 0x104   :  { %400 = vsyncpa [#allocation3], 1 }
 0x105   :  { %402 = vsyncpa [#allocation3 + $0x1], 1 }
 0x106   :  { %403 = vsyncpa [#allocation4], 1 }
 0x107   :  { %405 = vsyncpa [#allocation4 + $0x1], 1 }

</bundles_post_ra>
